<compile_context>
chip_gen: v6e
topology: v6e:2x2x1
jax: 0.10.0
libtpu: 0.0.40
codegen_flags: <defaults>
</compile_context>

<pallas_src>
import functools

import jax
import jax.numpy as jnp
from jax.experimental import pallas as pl
from jax.experimental.pallas import tpu as pltpu


def _round_up(x: int, m: int) -> int:
    return ((x + m - 1) // m) * m


def _discriminator_kernel(x_ref, w1_ref, b1_ref, w2t_ref, b2_ref, o_ref):
    # Layer 1: (tb, K) @ (K, H) on the MXU with f32 accumulation; bias + ReLU on the
    # VPU. x is cast to the weight dtype in-kernel (no-op for f32, cheap for bf16).
    x = x_ref[...].astype(w1_ref.dtype)
    h = jnp.dot(x, w1_ref[...], preferred_element_type=jnp.float32)
    h = jnp.maximum(h + b1_ref[...], 0.0)
    # Layer 2 (out_features = 1): multiply by w2^T (broadcast over rows, VPU) and
    # reduce along lanes (XLU) -> (tb, 1). No padded output slab, no N=1 MXU pass;
    # the epilogue (bias + sigmoid) touches a single column.
    y = jnp.sum(h * w2t_ref[...], axis=-1, keepdims=True)
    o_ref[...] = jax.nn.sigmoid(y + b2_ref[0])        # b2 scalar from SMEM, f32 EUP


def init_params(key, input_dim, hidden_dim):
    """nn.Linear default init (uniform +/- 1/sqrt(fan_in)).
    Weights stored as (in_features, out_features)."""
    k1, k2, k3, k4 = jax.random.split(key, 4)
    bound1 = 1.0 / jnp.sqrt(input_dim)
    bound2 = 1.0 / jnp.sqrt(hidden_dim)
    w1 = jax.random.uniform(k1, (input_dim, hidden_dim), jnp.float32, -bound1, bound1)
    b1 = jax.random.uniform(k2, (1, hidden_dim), jnp.float32, -bound1, bound1)
    w2 = jax.random.uniform(k3, (hidden_dim, 1), jnp.float32, -bound2, bound2)
    b2 = jax.random.uniform(k4, (1, 1), jnp.float32, -bound2, bound2)
    return w1, b1, w2, b2


def prepare_params(w1, b1, w2, b2, *, compute_dtype=jnp.float32):
    """One-time weight preparation (no padding of any kind).
      * w1:  (in_dim, hidden) cast to compute_dtype (MXU operand; bf16 OK on all gens)
      * b1:  (1, hidden) f32
      * w2t: (1, hidden)  f32  (= w2^T, used as a broadcast row in the kernel)
      * b2:  (1,)         f32  scalar living in SMEM
    """
    w1p = w1.astype(compute_dtype)
    b1p = b1.reshape(1, -1).astype(jnp.float32)
    w2t = w2.reshape(1, -1).astype(jnp.float32)
    b2s = b2.reshape(-1).astype(jnp.float32)
    return w1p, b1p, w2t, b2s


@functools.partial(jax.jit, static_argnames=("tile_b",))
def discriminator_forward(x, w1p, b1p, w2t, b2s, *, tile_b=512):
    """x: (B, input_dim) f32. Params from prepare_params(). Returns (B, 1) f32."""
    B, in_dim = x.shape
    k_dim, hidden = w1p.shape
    assert k_dim == in_dim

    # Batch tile: multiple of 16 (covers bf16 sublane packing), capped at the batch.
    tb = min(_round_up(tile_b, 16), _round_up(B, 16))
    # v7x megacore: if the whole batch fits one tile but is big enough to split,
    # halve the tile so the "parallel" axis has >= 2 grid steps (one per TensorCore).
    if _round_up(B, 16) <= tb and B >= 32:
        tb = _round_up(pl.cdiv(_round_up(B, 16), 2), 16)
    grid = (pl.cdiv(B, tb),)

    return pl.pallas_call(
        _discriminator_kernel,
        out_shape=jax.ShapeDtypeStruct((B, 1), jnp.float32),
        grid=grid,
        in_specs=[
            pl.BlockSpec((tb, in_dim), lambda i: (i, 0)),      # x: batch-tiled, no pad/copy
            pl.BlockSpec((in_dim, hidden), lambda i: (0, 0)),  # w1: VMEM-resident
            pl.BlockSpec((1, hidden), lambda i: (0, 0)),       # b1: VMEM-resident
            pl.BlockSpec((1, hidden), lambda i: (0, 0)),       # w2^T: VMEM-resident
            pl.BlockSpec(memory_space=pltpu.SMEM),             # b2 scalar in SMEM
        ],
        out_specs=pl.BlockSpec((tb, 1), lambda i: (i, 0)),     # exact (B, 1) output
        compiler_params=pltpu.CompilerParams(
            dimension_semantics=("parallel",)),                # batch axis -> 2 TCs on v7x
    )(x, w1p, b1p, w2t, b2s)


if __name__ == "__main__":
    input_dim = 100
    hidden_dim = 128
    batch = 8

    key = jax.random.PRNGKey(0)
    kx, kp = jax.random.split(key)
    x = jax.random.normal(kx, (batch, input_dim), jnp.float32)
    w1, b1, w2, b2 = init_params(kp, input_dim, hidden_dim)

    # Reference (same math as the PyTorch module).
    ref = jax.nn.sigmoid(jnp.maximum(x @ w1 + b1, 0.0) @ w2 + b2)

    # f32 path (exact check).
    params_f32 = prepare_params(w1, b1, w2, b2, compute_dtype=jnp.float32)
    out = jax.block_until_ready(discriminator_forward(x, *params_f32))
    assert out.shape == (batch, 1)
    assert jnp.allclose(out, ref, atol=1e-5, rtol=1e-5), "f32 mismatch vs reference"

    # bf16 layer-1 MXU operands (valid on v5e/v6e/v7x); f32 accumulation/epilogue.
    params_bf16 = prepare_params(w1, b1, w2, b2, compute_dtype=jnp.bfloat16)
    out_bf = jax.block_until_ready(discriminator_forward(x, *params_bf16))
    assert out_bf.shape == (batch, 1)
    assert jnp.allclose(out_bf, ref, atol=3e-2, rtol=3e-2), "bf16 mismatch vs reference"

    # Multi-tile path with a partial last block (exercises grid > 1 and OOB-row drop).
    xb = jax.random.normal(kx, (200, input_dim), jnp.float32)
    refb = jax.nn.sigmoid(jnp.maximum(xb @ w1 + b1, 0.0) @ w2 + b2)
    outb = jax.block_until_ready(discriminator_forward(xb, *params_f32, tile_b=64))
    assert outb.shape == (200, 1)
    assert jnp.allclose(outb, refb, atol=1e-5, rtol=1e-5), "multi-tile mismatch"

    print("KERNEL_OK")
</pallas_src>

<mosaic_0001>
module attributes {stable_mosaic.version = 11 : i64} {
  func.func @_discriminator_kernel(%arg0: i32, %arg1: memref<16x100xf32, #tpu.memory_space<vmem>>, %arg2: memref<100x128xf32, #tpu.memory_space<vmem>>, %arg3: memref<1x128xf32, #tpu.memory_space<vmem>>, %arg4: memref<1x128xf32, #tpu.memory_space<vmem>>, %arg5: memref<1xf32, #tpu.memory_space<smem>>, %arg6: memref<16x1xf32, #tpu.memory_space<vmem>>) attributes {dimension_semantics = [#tpu.dimension_semantics<parallel>], iteration_bounds = array<i64: 1>, scalar_prefetch = 0 : i64, scratch_operands = 0 : i64, tpu.core_type = #tpu.core_type<tc>, window_params = [{transform_indices = @transform_0, window_bounds = array<i64: 16, 100>}, {pipeline_mode = #tpu.pipeline_mode<synchronous>, transform_indices = @transform_1, window_bounds = array<i64: 100, 128>}, {pipeline_mode = #tpu.pipeline_mode<synchronous>, transform_indices = @transform_2, window_bounds = array<i64: 1, 128>}, {pipeline_mode = #tpu.pipeline_mode<synchronous>, transform_indices = @transform_3, window_bounds = array<i64: 1, 128>}, {transform_indices = @transform_4, window_bounds = array<i64: 1>}, {transform_indices = @transform_5, window_bounds = array<i64: 16, 1>}]} {
    %c0 = arith.constant 0 : index
    %c0_0 = arith.constant 0 : index
    %0 = vector.load %arg1[%c0, %c0_0] : memref<16x100xf32, #tpu.memory_space<vmem>>, vector<16x100xf32>
    %c0_1 = arith.constant 0 : index
    %c0_2 = arith.constant 0 : index
    %1 = vector.load %arg2[%c0_1, %c0_2] : memref<100x128xf32, #tpu.memory_space<vmem>>, vector<100x128xf32>
    %cst = arith.constant dense<0.000000e+00> : vector<16x128xf32>
    %2 = tpu.matmul %0, %1, %cst {dimension_numbers = #tpu.dot_dimension_numbers<[1], [0], [0], [1], [0, 0, 1, 1], [], []>} : vector<16x100xf32>, vector<100x128xf32>, vector<16x128xf32> -> vector<16x128xf32>
    %c0_3 = arith.constant 0 : index
    %c0_4 = arith.constant 0 : index
    %3 = vector.load %arg3[%c0_3, %c0_4] : memref<1x128xf32, #tpu.memory_space<vmem>>, vector<1x128xf32>
    %4 = vector.broadcast %3 : vector<1x128xf32> to vector<16x128xf32>
    %5 = arith.addf %2, %4 : vector<16x128xf32>
    %cst_5 = arith.constant 0.000000e+00 : f32
    %6 = vector.broadcast %cst_5 : f32 to vector<16x128xf32>
    %7 = arith.maximumf %5, %6 : vector<16x128xf32>
    %c0_6 = arith.constant 0 : index
    %c0_7 = arith.constant 0 : index
    %8 = vector.load %arg4[%c0_6, %c0_7] : memref<1x128xf32, #tpu.memory_space<vmem>>, vector<1x128xf32>
    %9 = vector.broadcast %8 : vector<1x128xf32> to vector<16x128xf32>
    %10 = arith.mulf %7, %9 : vector<16x128xf32>
    %cst_8 = arith.constant dense<0.000000e+00> : vector<16xf32>
    %11 = vector.multi_reduction <add>, %10, %cst_8 [1] : vector<16x128xf32> to vector<16xf32>
    %12 = vector.shape_cast %11 : vector<16xf32> to vector<16x1xf32>
    %c0_9 = arith.constant 0 : index
    %13 = memref.load %arg5[%c0_9] : memref<1xf32, #tpu.memory_space<smem>>
    %14 = vector.broadcast %13 : f32 to vector<16x1xf32>
    %15 = arith.addf %12, %14 : vector<16x1xf32>
    %16 = arith.negf %15 : vector<16x1xf32>
    %17 = math.exp %16 : vector<16x1xf32>
    %cst_10 = arith.constant 1.000000e+00 : f32
    %18 = vector.broadcast %cst_10 : f32 to vector<16x1xf32>
    %19 = arith.addf %18, %17 : vector<16x1xf32>
    %20 = arith.divf %18, %19 : vector<16x1xf32>
    %c0_11 = arith.constant 0 : index
    %c0_12 = arith.constant 0 : index
    %21 = vector.load %arg6[%c0_11, %c0_12] : memref<16x1xf32, #tpu.memory_space<vmem>>, vector<16x1xf32>
    tpu.vector_store %arg6[%c0_11, %c0_12], %20 {strides = array<i32>} : memref<16x1xf32, #tpu.memory_space<vmem>>, vector<16x1xf32>,
    return
  }
  func.func @transform_0(%arg0: i32) -> (i32, i32) {
    %c0_i32 = arith.constant 0 : i32
    %c0_i32_0 = arith.constant 0 : i32
    return %arg0, %c0_i32 : i32, i32
  }
  func.func @transform_1(%arg0: i32) -> (i32, i32) {
    %c0_i32 = arith.constant 0 : i32
    %c0_i32_0 = arith.constant 0 : i32
    %c0_i32_1 = arith.constant 0 : i32
    return %c0_i32, %c0_i32_0 : i32, i32
  }
  func.func @transform_2(%arg0: i32) -> (i32, i32) {
    %c0_i32 = arith.constant 0 : i32
    %c0_i32_0 = arith.constant 0 : i32
    %c0_i32_1 = arith.constant 0 : i32
    return %c0_i32, %c0_i32_0 : i32, i32
  }
  func.func @transform_3(%arg0: i32) -> (i32, i32) {
    %c0_i32 = arith.constant 0 : i32
    %c0_i32_0 = arith.constant 0 : i32
    %c0_i32_1 = arith.constant 0 : i32
    return %c0_i32, %c0_i32_0 : i32, i32
  }
  func.func @transform_4(%arg0: i32) -> i32 {
    %c0_i32 = arith.constant 0 : i32
    %c0_i32_0 = arith.constant 0 : i32
    return %c0_i32 : i32
  }
  func.func @transform_5(%arg0: i32) -> (i32, i32) {
    %c0_i32 = arith.constant 0 : i32
    %c0_i32_0 = arith.constant 0 : i32
    return %arg0, %c0_i32 : i32, i32
  }
}

</mosaic_0001>

<bundles_post_ra>
// kernel: discriminator_forward.1
= control target key start
LH: loop header
LB: loop body
LE: loop exit
PB: predicated region body
PF: predicated region fallthrough
CT: control target
= control target key end

     0   :  { %11 = vsyncpa [#allocation4], 0  ;;  %s395_s0 = inlined_call_operand.hbm [shape: f32[8,100], index: 0, kind: input, shape index: {}]   ;;  %s396_s1 = inlined_call_operand.hbm [shape: f32[100,128], index: 1, kind: input, shape index: {}]   ;;  %s397_s2 = inlined_call_operand.vmem [shape: f32[1,128], index: 2, kind: input, shape index: {}]   ;;  %s398_s3 = inlined_call_operand.vmem [shape: f32[1,128], index: 3, kind: input, shape index: {}]   ;;  %s399_s4 = inlined_call_operand.<no memory space> [shape: f32[1], index: 4, kind: input, shape index: {}]   ;;  %s400_s5 = inlined_call_operand.vmem [shape: f32[8,1], index: 5, kind: output, shape index: {}]  }
   0x1   :  { %12 = vsyncpa [#allocation6], 0 }
   0x2   :  { %17 = vsyncadd [#allocation4], 128  ;;  %s341_s18 = smov [#allocation3]  }
   0x3   :  { %s18_s19 = sshll.u32 %s341_s18, 4  ;;  %s19_s19 = int_to_ptr.vmem [resolvable:$true] %s18_s19 }
   0x4   :  { %s305_s20 = scalar_lea.vmem %s19_s19, 128  ;;  %s309_s21 = scalar_lea.vmem %s19_s19, 256 }
   0x5   :  { %p306_p0 = scmp.ne.s32.totalorder %s19_s19, %s305_s20  ;;  %p310_p1 = scmp.lt.s32.totalorder %s19_s19, %s19_s19 }
   0x6   :  { %p311_p2 = scmp.lt.s32.totalorder %s309_s21, %s305_s20 }
   0x8   :  { %p312_p3 = por %p311_p2, %p310_p1 }
   0xa   :  { %p313_p4 = pnand %p312_p3, %p306_p0 }
   0xc   :  { %316 = shalt.err (!%p313_p4)
}
   0xd   :  { %s342_s22 = smov 128   ;;  %s343_s23 = smov 8  }
   0xe   :  { %24 = dma.hbm_to_vmem [thread:$0]  %s395_s0, 128, %s19_s19, [#allocation4], %s342_s22, %s342_s22, %s343_s23  }
   0xf   :  { %s344_s26 = smov [#allocation5]  }
  0x10   :  { %s30_s27 = sshll.u32 %s344_s26, 4  ;;  %s31_s27 = int_to_ptr.vmem [resolvable:$true] %s30_s27 }
  0x11   :  { %s325_s28 = scalar_lea.vmem %s31_s27, 1664  ;;  %p330_p6 = scmp.lt.s32.totalorder %s31_s27, %s31_s27 }
  0x12   :  { %p326_p5 = scmp.ne.s32.totalorder %s31_s27, %s325_s28  ;;  %p331_p7 = scmp.lt.s32.totalorder %s325_s28, %s325_s28 }
  0x14   :  { %p332_p8 = por %p331_p7, %p330_p6 }
  0x16   :  { %p333_p9 = pnand %p332_p8, %p326_p5 }
  0x18   :  { %336 = shalt.err (!%p333_p9)
}
  0x19   :  { %36 = dma.hbm_to_vmem [thread:$0]  %s396_s1, 1664, %s31_s27, [#allocation6], %s342_s22, %s342_s22, %s343_s23  }
  0x1a   :  { %337 = dma.done.wait [#allocation4], 256  }
  0x1b   :  { %338 = vsyncadd [#allocation4], 4294967040 }
  0x1c   :  { %339 = dma.done.wait [#allocation6], 1664  }
  0x1d   :  { %340 = vsyncadd [#allocation6], 4294965632  ;;  %vm78_vm0 = vcmask 1043456   ;;  %v63_v0 = vld [vmem:[#allocation5 + $0x60] sm:$0xf]  ;;  %v62_v1 = vld [vmem:[#allocation5 + $0x58] sm:$0xff]  ;;  %v173_v25 = vstv %s399_s4 }
  0x1e   :  { %256 = vmatprep.subr.msk.mxu0 %vm78_vm0, %v63_v0  ;;  %v61_v2 = vld [vmem:[#allocation5 + $0x50] sm:$0xff]  ;;  %vm71_vm1 = vcmask 818176   ;;  %v60_v3 = vld [vmem:[#allocation5 + $0x48] sm:$0xff]  ;;  %v59_v5 = vld [vmem:[#allocation5 + $0x40] sm:$0xff]  ;;  %vm188_vm2 = vcmask 7168  }
  0x1f   :  { %257 = vmatpush3.msk.msra.mxu0 %vm78_vm0, %v63_v0  ;;  %v49_v4 = vld [vmem:[#allocation3] sm:$0xff]  ;;  %v58_v6 = vld [vmem:[#allocation5 + $0x38] sm:$0xff]  ;;  %v56_v8 = vld [vmem:[#allocation5 + $0x28] sm:$0xff] }
  0x20   :  { %258 = vmatprep.subr.mxu0 %v62_v1  ;;  %282 = vmatprep.mubr.msk.f32.mxu0 %vm71_vm1, %v49_v4  ;;  %v57_v7 = vld [vmem:[#allocation5 + $0x30] sm:$0xff]  ;;  %v55_v9 = vld [vmem:[#allocation5 + $0x20] sm:$0xff]  ;;  %v54_v10 = vld [vmem:[#allocation5 + $0x18] sm:$0xff] }
  0x21   :  { %259 = vmatpush3.msra.mxu0 %v62_v1  ;;  %v53_v11 = vld [vmem:[#allocation5 + $0x10] sm:$0xff]  ;;  %v52_v12 = vld [vmem:[#allocation5 + $0x8] sm:$0xff]  ;;  %v51_v13 = vld [vmem:[#allocation5] sm:$0xff] }
  0x22   :  { %260 = vmatprep.subr.mxu0 %v61_v2  ;;  %v50_v14 = vld [vmem:[#allocation3 + $0x8] sm:$0xff]  ;;  %v234_v16 = vld [vmem:[%s397_s2] ss:$0 sm:$0xff] }
  0x23   :  { %261 = vmatpush3.msra.mxu0 %v61_v2  ;;  %v238_v21 = vld [vmem:[%s398_s3] ss:$0 sm:$0xff] }
  0x24   :  { %262 = vmatprep.subr.mxu0 %v60_v3 }
  0x25   :  { %263 = vmatpush3.msra.mxu0 %v60_v3 }
  0x26   :  { %264 = vmatprep.subr.mxu0 %v59_v5 }
  0x27   :  { %265 = vmatpush3.msra.mxu0 %v59_v5 }
  0x28   :  { %266 = vmatprep.subr.mxu0 %v58_v6 }
  0x29   :  { %267 = vmatpush3.msra.mxu0 %v58_v6 }
  0x2a   :  { %268 = vmatprep.subr.mxu0 %v57_v7 }
  0x2b   :  { %269 = vmatpush3.msra.mxu0 %v57_v7 }
  0x2c   :  { %270 = vmatprep.subr.mxu0 %v56_v8 }
  0x2d   :  { %271 = vmatpush3.msra.mxu0 %v56_v8 }
  0x2e   :  { %272 = vmatprep.subr.mxu0 %v55_v9 }
  0x2f   :  { %273 = vmatpush3.msra.mxu0 %v55_v9 }
  0x30   :  { %274 = vmatprep.subr.mxu0 %v54_v10 }
  0x31   :  { %275 = vmatpush3.msra.mxu0 %v54_v10 }
  0x32   :  { %276 = vmatprep.subr.mxu0 %v53_v11 }
  0x33   :  { %277 = vmatpush3.msra.mxu0 %v53_v11 }
  0x34   :  { %278 = vmatprep.subr.mxu0 %v52_v12 }
  0x35   :  { %279 = vmatpush3.msra.mxu0 %v52_v12 }
  0x36   :  { %280 = vmatprep.subr.mxu0 %v51_v13 }
  0x37   :  { %281 = vmatpush3.msra.mxu0 %v51_v13 }
  0x38   :  { %283 = vmatmul.mubr.msk.f32.vlgmr.msra.gmra.mxu0 %vm71_vm1, %v50_v14 }
  0xf8   :  { %v284_v15 = vpop.f32.mrf.mxu0 }
  0xf9   :  { %v154_v18 = vadd.f32 %v284_v15, %v234_v16 }
  0xfa   :  { %v148_v17 = vpop.f32.mrf.mxu0 }
  0xfb   :  { %v149_v19 = vadd.f32 %v234_v16, %v148_v17  ;;  %v158_v22 = vmax.f32 %v154_v18, 0.0 }
  0xfd   :  { %v157_v20 = vmax.f32 %v149_v19, 0.0  ;;  %v167_v24 = vmul.f32 %v238_v21, %v158_v22 }
  0xff   :  { %v166_v23 = vmul.f32 %v238_v21, %v157_v20 }
 0x101   :  { %168 = vadd.xlane.f32.xlu0 %v166_v23 }
 0x105   :  { %170 = vadd.xlane.f32.xlu0 %v167_v24 }
 0x18a   :  { %v169_v26 = vpop.xlane.xlu0 %168 }
 0x18b   :  { %v174_v27 = vadd.f32 %v173_v25, %v169_v26 }
 0x18d   :  { %v239_v28 = vmul.f32 -1.442695, %v174_v27 }
 0x18e   :  { %v171_v29 = vpop.xlane.xlu0 %170 }
 0x18f   :  { %289 = vpow2.f32 %v239_v28  ;;  %v175_v30 = vadd.f32 %v173_v25, %v171_v29 }
 0x191   :  { %v240_v31 = vmul.f32 -1.442695, %v175_v30 }
 0x193   :  { %291 = vpow2.f32 %v240_v31 }
 0x19c   :  { %v290_v32 = vpop.eup %289 }
 0x19d   :  { %v182_v33 = vadd.f32 1.0, %v290_v32 }
 0x19f   :  { %293 = vrcp.f32 %v182_v33 }
 0x1a0   :  { %v292_v34 = vpop.eup %291 }
 0x1a1   :  { %v183_v35 = vadd.f32 1.0, %v292_v34 }
 0x1a3   :  { %295 = vrcp.f32 %v183_v35 }
 0x1ac   :  { %v294_v36 = vpop.eup %293 }
 0x1ad   :  { %189 = vst.msk [vmem:[#allocation7] sm:$0xff] %vm188_vm2, %v294_v36 }
 0x1b0   :  { %v296_v37 = vpop.eup %295 }
 0x1b4   :  { %v221_v38 = vld [vmem:[#allocation7] sm:$0xff] }
 0x1b5   :  { %222 = vst [vmem:[%s400_s5] sm:$0xff] %v221_v38 }
 0x1b6   :  { %228 = vsyncpa [#allocation4], 1 }
 0x1b7   :  { %229 = vsyncpa [#allocation6], 1 }

</bundles_post_ra>
